<compile_context>
chip_gen: v5e
topology: v5e:2x2
jax: 0.10.0
libtpu: 0.0.40
codegen_flags: <defaults>
</compile_context>

<pallas_src>
import functools
import math

import jax
import jax.numpy as jnp
from jax.experimental import pallas as pl
from jax.experimental.pallas import tpu as pltpu


def mha_kernel(x_ref, wqkv_ref, wo_ref, bo_ref, out_ref, *,
               batch, seq, d_model, num_heads, dk, causal):
    """Fused multi-head attention forward, single invocation.

    x_ref:    (B*S, 3D) f32 — lane-concat of [query | key | value] activations
    wqkv_ref: (3D, 3D)  f32 — block-diag(Wq^T * 1/sqrt(dk), Wk^T, Wv^T)
    wo_ref:   (D, D)    f32 — output-projection weight, [in, out] layout
    bo_ref:   (1, D)    f32 — output-projection bias
    out_ref:  (B*S, D)  f32
    """
    D = d_model

    # Fused QKV projection: one MXU matmul (M=B*S, K=N=3D).  Scale already
    # folded into the Wq block on the host.
    qkv = jnp.dot(x_ref[...], wqkv_ref[...],
                  preferred_element_type=jnp.float32)          # (B*S, 3D)

    wo = wo_ref[...]                                           # (D, D)
    bias = bo_ref[...]                                         # (1, D)

    if causal:
        row = jax.lax.broadcasted_iota(jnp.int32, (seq, seq), 0)
        col = jax.lax.broadcasted_iota(jnp.int32, (seq, seq), 1)
        # Matches torch: triu(ones, diagonal=1) * -1e13 added to the scores.
        mask_add = jnp.where(col > row, jnp.float32(-1e13), jnp.float32(0.0))

    for b in range(batch):                       # static unroll, tiny B
        r0 = b * seq
        qb = qkv[r0:r0 + seq, 0 * D:1 * D]       # (S, D), already scaled
        kb = qkv[r0:r0 + seq, 1 * D:2 * D]
        vb = qkv[r0:r0 + seq, 2 * D:3 * D]

        # Projected-output accumulator, bias folded in up front.
        acc = jnp.zeros((seq, D), jnp.float32) + bias

        for h in range(num_heads):               # static unroll, tiny H
            lo = h * dk
            qh = qb[:, lo:lo + dk]               # static slices of a value
            kh = kb[:, lo:lo + dk]
            vh = vb[:, lo:lo + dk]

            # scores = qh @ kh^T, contracting dk without an explicit transpose
            scores = jax.lax.dot_general(
                qh, kh, (((1,), (1,)), ((), ())),
                preferred_element_type=jnp.float32)            # (S, S)
            if causal:
                scores = scores + mask_add

            scores = scores - jnp.max(scores, axis=-1, keepdims=True)
            p = jnp.exp(scores)                                # un-normalized
            denom = jnp.sum(p, axis=-1, keepdims=True)         # (S, 1)

            # Deferred normalization: P@V first, then one EUP reciprocal
            # broadcast over dk (S*dk multiplies instead of S*S divides).
            oh = jnp.dot(p, vh, preferred_element_type=jnp.float32)
            oh = oh * pl.reciprocal(denom, approx=True)        # (S, dk)

            # concat(heads) @ Wo_t == sum_h oh @ Wo_t[lo:lo+dk, :]
            acc = acc + jnp.dot(oh, wo[lo:lo + dk, :],
                                preferred_element_type=jnp.float32)

        out_ref[r0:r0 + seq, :] = acc.astype(out_ref.dtype)


def mha_forward(query_data, key_data, value_data, wq, wk, wv, wo, bo, *,
                dk, mask):
    """Pallas wrapper matching MultiHeadAttention.forward (eval mode).

    query_data/key_data/value_data: [B, S, d_model]
    wq, wk, wv, wo: [d_model, d_model]  (PyTorch nn.Linear layout: [out, in])
    bo:             [d_model]           (projection_layer bias)
    """
    B, S, D = query_data.shape
    assert D % dk == 0, "d_model must be a multiple of dk"
    H = D // dk
    f32 = jnp.float32
    scale = 1.0 / math.sqrt(dk)

    # Flatten batch*seq into rows (one sublane-dense slab) and lane-concat the
    # three activation streams so the kernel does one fused projection matmul.
    xcat = jnp.concatenate(
        [query_data.reshape(B * S, D),
         key_data.reshape(B * S, D),
         value_data.reshape(B * S, D)],
        axis=-1).astype(f32)                                   # (B*S, 3D)

    # Block-diagonal fused QKV weight in [in, out] layout.  The attention
    # scale 1/sqrt(dk) is folded into the Wq block.
    wq_t = (wq.T * scale).astype(f32)
    wk_t = wk.T.astype(f32)
    wv_t = wv.T.astype(f32)
    wqkv = jnp.zeros((3 * D, 3 * D), f32)
    wqkv = wqkv.at[0 * D:1 * D, 0 * D:1 * D].set(wq_t)
    wqkv = wqkv.at[1 * D:2 * D, 1 * D:2 * D].set(wk_t)
    wqkv = wqkv.at[2 * D:3 * D, 2 * D:3 * D].set(wv_t)

    wo_t = wo.T.astype(f32)                                    # (D, D) [in,out]
    bo2 = bo.reshape(1, D).astype(f32)

    kernel = functools.partial(
        mha_kernel, batch=B, seq=S, d_model=D, num_heads=H, dk=dk,
        causal=bool(mask))

    # Single invocation: no grid, everything resident in VMEM for the whole
    # (tiny) problem.  With no grid, multi-buffering concerns (feedback #7)
    # do not apply.
    vmem_spec = pl.BlockSpec(memory_space=pltpu.MemorySpace.VMEM)
    out_flat = pl.pallas_call(
        kernel,
        out_shape=jax.ShapeDtypeStruct((B * S, D), f32),
        in_specs=[vmem_spec, vmem_spec, vmem_spec, vmem_spec],
        out_specs=vmem_spec,
    )(xcat, wqkv, wo_t, bo2)

    return out_flat.reshape(B, S, D)


def mha_reference(query_data, key_data, value_data, wq, wk, wv, wo, bo, *,
                  dk, mask):
    """Pure-JAX reference matching the PyTorch module (eval mode)."""
    B, S, D = query_data.shape
    H = D // dk

    def proj(x, w):                                   # x @ w.T, w is [out, in]
        return jnp.einsum("bsd,ed->bse", x, w)

    q = proj(query_data, wq).reshape(B, S, H, dk).transpose(0, 2, 1, 3)
    k = proj(key_data, wk).reshape(B, S, H, dk).transpose(0, 2, 1, 3)
    v = proj(value_data, wv).reshape(B, S, H, dk).transpose(0, 2, 1, 3)

    scores = jnp.einsum("bhqd,bhkd->bhqk", q, k) / jnp.sqrt(jnp.float32(dk))
    if mask:
        m = jnp.triu(jnp.ones_like(scores), k=1) * jnp.float32(-1e13)
        scores = scores + m
    attn = jax.nn.softmax(scores, axis=-1)
    out = jnp.einsum("bhqk,bhkd->bhqd", attn, v)
    out = out.transpose(0, 2, 1, 3).reshape(B, S, D)
    return jnp.einsum("bsd,ed->bse", out, wo) + bo    # projection (with bias)


if __name__ == "__main__":
    key = jax.random.PRNGKey(0)
    ks = jax.random.split(key, 8)

    B, S, d_model, dk_model = 2, 8, 32, 8
    w_scale = 1.0 / math.sqrt(d_model)

    wq = jax.random.normal(ks[0], (d_model, d_model), jnp.float32) * w_scale
    wk = jax.random.normal(ks[1], (d_model, d_model), jnp.float32) * w_scale
    wv = jax.random.normal(ks[2], (d_model, d_model), jnp.float32) * w_scale
    wo = jax.random.normal(ks[3], (d_model, d_model), jnp.float32) * w_scale
    bo = jax.random.normal(ks[4], (d_model,), jnp.float32) * 0.1

    query_data = jax.random.normal(ks[5], (B, S, d_model), jnp.float32)
    key_data = jax.random.normal(ks[6], (B, S, d_model), jnp.float32)
    value_data = jax.random.normal(ks[7], (B, S, d_model), jnp.float32)

    for use_mask in (True, False):
        out = mha_forward(query_data, key_data, value_data,
                          wq, wk, wv, wo, bo, dk=dk_model, mask=use_mask)
        out = jax.block_until_ready(out)
        ref = mha_reference(query_data, key_data, value_data,
                            wq, wk, wv, wo, bo, dk=dk_model, mask=use_mask)
        assert out.shape == (B, S, d_model)
        # Tolerance accounts for MXU default (bf16-pass) f32 matmul rounding
        # (kernel and XLA reference) plus the approx EUP reciprocal.
        assert jnp.allclose(out, ref, atol=2e-2, rtol=2e-2), (
            f"mismatch vs reference (mask={use_mask})")

    print("KERNEL_OK")
</pallas_src>

<mosaic_0001>
module attributes {stable_mosaic.version = 11 : i64} {
  func.func @mha_kernel(%arg0: memref<16x96xf32, #tpu.memory_space<vmem>>, %arg1: memref<96x96xf32, #tpu.memory_space<vmem>>, %arg2: memref<32x32xf32, #tpu.memory_space<vmem>>, %arg3: memref<1x32xf32, #tpu.memory_space<vmem>>, %arg4: memref<16x32xf32, #tpu.memory_space<vmem>>) attributes {dimension_semantics = [], scalar_prefetch = 0 : i64, scratch_operands = 0 : i64, tpu.core_type = #tpu.core_type<tc>} {
    %c0 = arith.constant 0 : index
    %c0_0 = arith.constant 0 : index
    %0 = vector.load %arg0[%c0, %c0_0] : memref<16x96xf32, #tpu.memory_space<vmem>>, vector<16x96xf32>
    %c0_1 = arith.constant 0 : index
    %c0_2 = arith.constant 0 : index
    %1 = vector.load %arg1[%c0_1, %c0_2] : memref<96x96xf32, #tpu.memory_space<vmem>>, vector<96x96xf32>
    %cst = arith.constant dense<0.000000e+00> : vector<16x96xf32>
    %2 = tpu.matmul %0, %1, %cst {dimension_numbers = #tpu.dot_dimension_numbers<[1], [0], [0], [1], [0, 0, 1, 1], [], []>} : vector<16x96xf32>, vector<96x96xf32>, vector<16x96xf32> -> vector<16x96xf32>
    %c0_3 = arith.constant 0 : index
    %c0_4 = arith.constant 0 : index
    %3 = vector.load %arg2[%c0_3, %c0_4] : memref<32x32xf32, #tpu.memory_space<vmem>>, vector<32x32xf32>
    %c0_5 = arith.constant 0 : index
    %c0_6 = arith.constant 0 : index
    %4 = vector.load %arg3[%c0_5, %c0_6] : memref<1x32xf32, #tpu.memory_space<vmem>>, vector<1x32xf32>
    %5 = tpu.iota {dimensions = array<i32: 0>} : vector<8x8xi32>
    %6 = tpu.iota {dimensions = array<i32: 1>} : vector<8x8xi32>
    %7 = arith.cmpi sgt, %6, %5 : vector<8x8xi32>
    %cst_7 = arith.constant -9.99999982E+12 : f32
    %cst_8 = arith.constant 0.000000e+00 : f32
    %8 = vector.broadcast %cst_7 : f32 to vector<8x8xf32>
    %9 = vector.broadcast %cst_8 : f32 to vector<8x8xf32>
    %10 = arith.select %7, %8, %9 : vector<8x8xi1>, vector<8x8xf32>
    %11 = vector.extract_strided_slice %2 {offsets = [0, 0], sizes = [8, 32], strides = [1, 1]} : vector<16x96xf32> to vector<8x32xf32>
    %12 = vector.extract_strided_slice %2 {offsets = [0, 32], sizes = [8, 32], strides = [1, 1]} : vector<16x96xf32> to vector<8x32xf32>
    %13 = vector.extract_strided_slice %2 {offsets = [0, 64], sizes = [8, 32], strides = [1, 1]} : vector<16x96xf32> to vector<8x32xf32>
    %cst_9 = arith.constant 0.000000e+00 : f32
    %14 = vector.broadcast %cst_9 : f32 to vector<8x32xf32>
    %15 = vector.broadcast %4 : vector<1x32xf32> to vector<8x32xf32>
    %16 = arith.addf %14, %15 : vector<8x32xf32>
    %17 = vector.extract_strided_slice %11 {offsets = [0, 0], sizes = [8, 8], strides = [1, 1]} : vector<8x32xf32> to vector<8x8xf32>
    %18 = vector.extract_strided_slice %12 {offsets = [0, 0], sizes = [8, 8], strides = [1, 1]} : vector<8x32xf32> to vector<8x8xf32>
    %19 = vector.extract_strided_slice %13 {offsets = [0, 0], sizes = [8, 8], strides = [1, 1]} : vector<8x32xf32> to vector<8x8xf32>
    %cst_10 = arith.constant dense<0.000000e+00> : vector<8x8xf32>
    %20 = tpu.matmul %17, %18, %cst_10 {dimension_numbers = #tpu.dot_dimension_numbers<[1], [1], [0], [0], [0, 0, 1, 0], [], []>} : vector<8x8xf32>, vector<8x8xf32>, vector<8x8xf32> -> vector<8x8xf32>
    %21 = arith.addf %20, %10 : vector<8x8xf32>
    %cst_11 = arith.constant dense<0xFF800000> : vector<8xf32>
    %22 = vector.multi_reduction <maximumf>, %21, %cst_11 [1] : vector<8x8xf32> to vector<8xf32>
    %23 = vector.shape_cast %22 : vector<8xf32> to vector<8x1xf32>
    %24 = vector.broadcast %23 : vector<8x1xf32> to vector<8x8xf32>
    %25 = arith.subf %21, %24 : vector<8x8xf32>
    %26 = math.exp %25 : vector<8x8xf32>
    %cst_12 = arith.constant dense<0.000000e+00> : vector<8xf32>
    %27 = vector.multi_reduction <add>, %26, %cst_12 [1] : vector<8x8xf32> to vector<8xf32>
    %28 = vector.shape_cast %27 : vector<8xf32> to vector<8x1xf32>
    %cst_13 = arith.constant dense<0.000000e+00> : vector<8x8xf32>
    %29 = tpu.matmul %26, %19, %cst_13 {dimension_numbers = #tpu.dot_dimension_numbers<[1], [0], [0], [1], [0, 0, 1, 1], [], []>} : vector<8x8xf32>, vector<8x8xf32>, vector<8x8xf32> -> vector<8x8xf32>
    %30 = tpu.reciprocal %28 {approx = true} : vector<8x1xf32> -> vector<8x1xf32>
    %31 = vector.broadcast %30 : vector<8x1xf32> to vector<8x8xf32>
    %32 = arith.mulf %29, %31 : vector<8x8xf32>
    %33 = vector.extract_strided_slice %3 {offsets = [0, 0], sizes = [8, 32], strides = [1, 1]} : vector<32x32xf32> to vector<8x32xf32>
    %cst_14 = arith.constant dense<0.000000e+00> : vector<8x32xf32>
    %34 = tpu.matmul %32, %33, %cst_14 {dimension_numbers = #tpu.dot_dimension_numbers<[1], [0], [0], [1], [0, 0, 1, 1], [], []>} : vector<8x8xf32>, vector<8x32xf32>, vector<8x32xf32> -> vector<8x32xf32>
    %35 = arith.addf %16, %34 : vector<8x32xf32>
    %36 = vector.extract_strided_slice %11 {offsets = [0, 8], sizes = [8, 8], strides = [1, 1]} : vector<8x32xf32> to vector<8x8xf32>
    %37 = vector.extract_strided_slice %12 {offsets = [0, 8], sizes = [8, 8], strides = [1, 1]} : vector<8x32xf32> to vector<8x8xf32>
    %38 = vector.extract_strided_slice %13 {offsets = [0, 8], sizes = [8, 8], strides = [1, 1]} : vector<8x32xf32> to vector<8x8xf32>
    %cst_15 = arith.constant dense<0.000000e+00> : vector<8x8xf32>
    %39 = tpu.matmul %36, %37, %cst_15 {dimension_numbers = #tpu.dot_dimension_numbers<[1], [1], [0], [0], [0, 0, 1, 0], [], []>} : vector<8x8xf32>, vector<8x8xf32>, vector<8x8xf32> -> vector<8x8xf32>
    %40 = arith.addf %39, %10 : vector<8x8xf32>
    %cst_16 = arith.constant dense<0xFF800000> : vector<8xf32>
    %41 = vector.multi_reduction <maximumf>, %40, %cst_16 [1] : vector<8x8xf32> to vector<8xf32>
    %42 = vector.shape_cast %41 : vector<8xf32> to vector<8x1xf32>
    %43 = vector.broadcast %42 : vector<8x1xf32> to vector<8x8xf32>
    %44 = arith.subf %40, %43 : vector<8x8xf32>
    %45 = math.exp %44 : vector<8x8xf32>
    %cst_17 = arith.constant dense<0.000000e+00> : vector<8xf32>
    %46 = vector.multi_reduction <add>, %45, %cst_17 [1] : vector<8x8xf32> to vector<8xf32>
    %47 = vector.shape_cast %46 : vector<8xf32> to vector<8x1xf32>
    %cst_18 = arith.constant dense<0.000000e+00> : vector<8x8xf32>
    %48 = tpu.matmul %45, %38, %cst_18 {dimension_numbers = #tpu.dot_dimension_numbers<[1], [0], [0], [1], [0, 0, 1, 1], [], []>} : vector<8x8xf32>, vector<8x8xf32>, vector<8x8xf32> -> vector<8x8xf32>
    %49 = tpu.reciprocal %47 {approx = true} : vector<8x1xf32> -> vector<8x1xf32>
    %50 = vector.broadcast %49 : vector<8x1xf32> to vector<8x8xf32>
    %51 = arith.mulf %48, %50 : vector<8x8xf32>
    %52 = vector.extract_strided_slice %3 {offsets = [8, 0], sizes = [8, 32], strides = [1, 1]} : vector<32x32xf32> to vector<8x32xf32>
    %cst_19 = arith.constant dense<0.000000e+00> : vector<8x32xf32>
    %53 = tpu.matmul %51, %52, %cst_19 {dimension_numbers = #tpu.dot_dimension_numbers<[1], [0], [0], [1], [0, 0, 1, 1], [], []>} : vector<8x8xf32>, vector<8x32xf32>, vector<8x32xf32> -> vector<8x32xf32>
    %54 = arith.addf %35, %53 : vector<8x32xf32>
    %55 = vector.extract_strided_slice %11 {offsets = [0, 16], sizes = [8, 8], strides = [1, 1]} : vector<8x32xf32> to vector<8x8xf32>
    %56 = vector.extract_strided_slice %12 {offsets = [0, 16], sizes = [8, 8], strides = [1, 1]} : vector<8x32xf32> to vector<8x8xf32>
    %57 = vector.extract_strided_slice %13 {offsets = [0, 16], sizes = [8, 8], strides = [1, 1]} : vector<8x32xf32> to vector<8x8xf32>
    %cst_20 = arith.constant dense<0.000000e+00> : vector<8x8xf32>
    %58 = tpu.matmul %55, %56, %cst_20 {dimension_numbers = #tpu.dot_dimension_numbers<[1], [1], [0], [0], [0, 0, 1, 0], [], []>} : vector<8x8xf32>, vector<8x8xf32>, vector<8x8xf32> -> vector<8x8xf32>
    %59 = arith.addf %58, %10 : vector<8x8xf32>
    %cst_21 = arith.constant dense<0xFF800000> : vector<8xf32>
    %60 = vector.multi_reduction <maximumf>, %59, %cst_21 [1] : vector<8x8xf32> to vector<8xf32>
    %61 = vector.shape_cast %60 : vector<8xf32> to vector<8x1xf32>
    %62 = vector.broadcast %61 : vector<8x1xf32> to vector<8x8xf32>
    %63 = arith.subf %59, %62 : vector<8x8xf32>
    %64 = math.exp %63 : vector<8x8xf32>
    %cst_22 = arith.constant dense<0.000000e+00> : vector<8xf32>
    %65 = vector.multi_reduction <add>, %64, %cst_22 [1] : vector<8x8xf32> to vector<8xf32>
    %66 = vector.shape_cast %65 : vector<8xf32> to vector<8x1xf32>
    %cst_23 = arith.constant dense<0.000000e+00> : vector<8x8xf32>
    %67 = tpu.matmul %64, %57, %cst_23 {dimension_numbers = #tpu.dot_dimension_numbers<[1], [0], [0], [1], [0, 0, 1, 1], [], []>} : vector<8x8xf32>, vector<8x8xf32>, vector<8x8xf32> -> vector<8x8xf32>
    %68 = tpu.reciprocal %66 {approx = true} : vector<8x1xf32> -> vector<8x1xf32>
    %69 = vector.broadcast %68 : vector<8x1xf32> to vector<8x8xf32>
    %70 = arith.mulf %67, %69 : vector<8x8xf32>
    %71 = vector.extract_strided_slice %3 {offsets = [16, 0], sizes = [8, 32], strides = [1, 1]} : vector<32x32xf32> to vector<8x32xf32>
    %cst_24 = arith.constant dense<0.000000e+00> : vector<8x32xf32>
    %72 = tpu.matmul %70, %71, %cst_24 {dimension_numbers = #tpu.dot_dimension_numbers<[1], [0], [0], [1], [0, 0, 1, 1], [], []>} : vector<8x8xf32>, vector<8x32xf32>, vector<8x32xf32> -> vector<8x32xf32>
    %73 = arith.addf %54, %72 : vector<8x32xf32>
    %74 = vector.extract_strided_slice %11 {offsets = [0, 24], sizes = [8, 8], strides = [1, 1]} : vector<8x32xf32> to vector<8x8xf32>
    %75 = vector.extract_strided_slice %12 {offsets = [0, 24], sizes = [8, 8], strides = [1, 1]} : vector<8x32xf32> to vector<8x8xf32>
    %76 = vector.extract_strided_slice %13 {offsets = [0, 24], sizes = [8, 8], strides = [1, 1]} : vector<8x32xf32> to vector<8x8xf32>
    %cst_25 = arith.constant dense<0.000000e+00> : vector<8x8xf32>
    %77 = tpu.matmul %74, %75, %cst_25 {dimension_numbers = #tpu.dot_dimension_numbers<[1], [1], [0], [0], [0, 0, 1, 0], [], []>} : vector<8x8xf32>, vector<8x8xf32>, vector<8x8xf32> -> vector<8x8xf32>
    %78 = arith.addf %77, %10 : vector<8x8xf32>
    %cst_26 = arith.constant dense<0xFF800000> : vector<8xf32>
    %79 = vector.multi_reduction <maximumf>, %78, %cst_26 [1] : vector<8x8xf32> to vector<8xf32>
    %80 = vector.shape_cast %79 : vector<8xf32> to vector<8x1xf32>
    %81 = vector.broadcast %80 : vector<8x1xf32> to vector<8x8xf32>
    %82 = arith.subf %78, %81 : vector<8x8xf32>
    %83 = math.exp %82 : vector<8x8xf32>
    %cst_27 = arith.constant dense<0.000000e+00> : vector<8xf32>
    %84 = vector.multi_reduction <add>, %83, %cst_27 [1] : vector<8x8xf32> to vector<8xf32>
    %85 = vector.shape_cast %84 : vector<8xf32> to vector<8x1xf32>
    %cst_28 = arith.constant dense<0.000000e+00> : vector<8x8xf32>
    %86 = tpu.matmul %83, %76, %cst_28 {dimension_numbers = #tpu.dot_dimension_numbers<[1], [0], [0], [1], [0, 0, 1, 1], [], []>} : vector<8x8xf32>, vector<8x8xf32>, vector<8x8xf32> -> vector<8x8xf32>
    %87 = tpu.reciprocal %85 {approx = true} : vector<8x1xf32> -> vector<8x1xf32>
    %88 = vector.broadcast %87 : vector<8x1xf32> to vector<8x8xf32>
    %89 = arith.mulf %86, %88 : vector<8x8xf32>
    %90 = vector.extract_strided_slice %3 {offsets = [24, 0], sizes = [8, 32], strides = [1, 1]} : vector<32x32xf32> to vector<8x32xf32>
    %cst_29 = arith.constant dense<0.000000e+00> : vector<8x32xf32>
    %91 = tpu.matmul %89, %90, %cst_29 {dimension_numbers = #tpu.dot_dimension_numbers<[1], [0], [0], [1], [0, 0, 1, 1], [], []>} : vector<8x8xf32>, vector<8x32xf32>, vector<8x32xf32> -> vector<8x32xf32>
    %92 = arith.addf %73, %91 : vector<8x32xf32>
    %c0_30 = arith.constant 0 : index
    %c0_31 = arith.constant 0 : index
    %93 = vector.load %arg4[%c0_30, %c0_31] : memref<16x32xf32, #tpu.memory_space<vmem>>, vector<8x32xf32>
    tpu.vector_store %arg4[%c0_30, %c0_31], %92 {strides = array<i32>} : memref<16x32xf32, #tpu.memory_space<vmem>>, vector<8x32xf32>,
    %94 = vector.extract_strided_slice %2 {offsets = [8, 0], sizes = [8, 32], strides = [1, 1]} : vector<16x96xf32> to vector<8x32xf32>
    %95 = vector.extract_strided_slice %2 {offsets = [8, 32], sizes = [8, 32], strides = [1, 1]} : vector<16x96xf32> to vector<8x32xf32>
    %96 = vector.extract_strided_slice %2 {offsets = [8, 64], sizes = [8, 32], strides = [1, 1]} : vector<16x96xf32> to vector<8x32xf32>
    %cst_32 = arith.constant 0.000000e+00 : f32
    %97 = vector.broadcast %cst_32 : f32 to vector<8x32xf32>
    %98 = vector.broadcast %4 : vector<1x32xf32> to vector<8x32xf32>
    %99 = arith.addf %97, %98 : vector<8x32xf32>
    %100 = vector.extract_strided_slice %94 {offsets = [0, 0], sizes = [8, 8], strides = [1, 1]} : vector<8x32xf32> to vector<8x8xf32>
    %101 = vector.extract_strided_slice %95 {offsets = [0, 0], sizes = [8, 8], strides = [1, 1]} : vector<8x32xf32> to vector<8x8xf32>
    %102 = vector.extract_strided_slice %96 {offsets = [0, 0], sizes = [8, 8], strides = [1, 1]} : vector<8x32xf32> to vector<8x8xf32>
    %cst_33 = arith.constant dense<0.000000e+00> : vector<8x8xf32>
    %103 = tpu.matmul %100, %101, %cst_33 {dimension_numbers = #tpu.dot_dimension_numbers<[1], [1], [0], [0], [0, 0, 1, 0], [], []>} : vector<8x8xf32>, vector<8x8xf32>, vector<8x8xf32> -> vector<8x8xf32>
    %104 = arith.addf %103, %10 : vector<8x8xf32>
    %cst_34 = arith.constant dense<0xFF800000> : vector<8xf32>
    %105 = vector.multi_reduction <maximumf>, %104, %cst_34 [1] : vector<8x8xf32> to vector<8xf32>
    %106 = vector.shape_cast %105 : vector<8xf32> to vector<8x1xf32>
    %107 = vector.broadcast %106 : vector<8x1xf32> to vector<8x8xf32>
    %108 = arith.subf %104, %107 : vector<8x8xf32>
    %109 = math.exp %108 : vector<8x8xf32>
    %cst_35 = arith.constant dense<0.000000e+00> : vector<8xf32>
    %110 = vector.multi_reduction <add>, %109, %cst_35 [1] : vector<8x8xf32> to vector<8xf32>
    %111 = vector.shape_cast %110 : vector<8xf32> to vector<8x1xf32>
    %cst_36 = arith.constant dense<0.000000e+00> : vector<8x8xf32>
    %112 = tpu.matmul %109, %102, %cst_36 {dimension_numbers = #tpu.dot_dimension_numbers<[1], [0], [0], [1], [0, 0, 1, 1], [], []>} : vector<8x8xf32>, vector<8x8xf32>, vector<8x8xf32> -> vector<8x8xf32>
    %113 = tpu.reciprocal %111 {approx = true} : vector<8x1xf32> -> vector<8x1xf32>
    %114 = vector.broadcast %113 : vector<8x1xf32> to vector<8x8xf32>
    %115 = arith.mulf %112, %114 : vector<8x8xf32>
    %116 = vector.extract_strided_slice %3 {offsets = [0, 0], sizes = [8, 32], strides = [1, 1]} : vector<32x32xf32> to vector<8x32xf32>
    %cst_37 = arith.constant dense<0.000000e+00> : vector<8x32xf32>
    %117 = tpu.matmul %115, %116, %cst_37 {dimension_numbers = #tpu.dot_dimension_numbers<[1], [0], [0], [1], [0, 0, 1, 1], [], []>} : vector<8x8xf32>, vector<8x32xf32>, vector<8x32xf32> -> vector<8x32xf32>
    %118 = arith.addf %99, %117 : vector<8x32xf32>
    %119 = vector.extract_strided_slice %94 {offsets = [0, 8], sizes = [8, 8], strides = [1, 1]} : vector<8x32xf32> to vector<8x8xf32>
    %120 = vector.extract_strided_slice %95 {offsets = [0, 8], sizes = [8, 8], strides = [1, 1]} : vector<8x32xf32> to vector<8x8xf32>
    %121 = vector.extract_strided_slice %96 {offsets = [0, 8], sizes = [8, 8], strides = [1, 1]} : vector<8x32xf32> to vector<8x8xf32>
    %cst_38 = arith.constant dense<0.000000e+00> : vector<8x8xf32>
    %122 = tpu.matmul %119, %120, %cst_38 {dimension_numbers = #tpu.dot_dimension_numbers<[1], [1], [0], [0], [0, 0, 1, 0], [], []>} : vector<8x8xf32>, vector<8x8xf32>, vector<8x8xf32> -> vector<8x8xf32>
    %123 = arith.addf %122, %10 : vector<8x8xf32>
    %cst_39 = arith.constant dense<0xFF800000> : vector<8xf32>
    %124 = vector.multi_reduction <maximumf>, %123, %cst_39 [1] : vector<8x8xf32> to vector<8xf32>
    %125 = vector.shape_cast %124 : vector<8xf32> to vector<8x1xf32>
    %126 = vector.broadcast %125 : vector<8x1xf32> to vector<8x8xf32>
    %127 = arith.subf %123, %126 : vector<8x8xf32>
    %128 = math.exp %127 : vector<8x8xf32>
    %cst_40 = arith.constant dense<0.000000e+00> : vector<8xf32>
    %129 = vector.multi_reduction <add>, %128, %cst_40 [1] : vector<8x8xf32> to vector<8xf32>
    %130 = vector.shape_cast %129 : vector<8xf32> to vector<8x1xf32>
    %cst_41 = arith.constant dense<0.000000e+00> : vector<8x8xf32>
    %131 = tpu.matmul %128, %121, %cst_41 {dimension_numbers = #tpu.dot_dimension_numbers<[1], [0], [0], [1], [0, 0, 1, 1], [], []>} : vector<8x8xf32>, vector<8x8xf32>, vector<8x8xf32> -> vector<8x8xf32>
    %132 = tpu.reciprocal %130 {approx = true} : vector<8x1xf32> -> vector<8x1xf32>
    %133 = vector.broadcast %132 : vector<8x1xf32> to vector<8x8xf32>
    %134 = arith.mulf %131, %133 : vector<8x8xf32>
    %135 = vector.extract_strided_slice %3 {offsets = [8, 0], sizes = [8, 32], strides = [1, 1]} : vector<32x32xf32> to vector<8x32xf32>
    %cst_42 = arith.constant dense<0.000000e+00> : vector<8x32xf32>
    %136 = tpu.matmul %134, %135, %cst_42 {dimension_numbers = #tpu.dot_dimension_numbers<[1], [0], [0], [1], [0, 0, 1, 1], [], []>} : vector<8x8xf32>, vector<8x32xf32>, vector<8x32xf32> -> vector<8x32xf32>
    %137 = arith.addf %118, %136 : vector<8x32xf32>
    %138 = vector.extract_strided_slice %94 {offsets = [0, 16], sizes = [8, 8], strides = [1, 1]} : vector<8x32xf32> to vector<8x8xf32>
    %139 = vector.extract_strided_slice %95 {offsets = [0, 16], sizes = [8, 8], strides = [1, 1]} : vector<8x32xf32> to vector<8x8xf32>
    %140 = vector.extract_strided_slice %96 {offsets = [0, 16], sizes = [8, 8], strides = [1, 1]} : vector<8x32xf32> to vector<8x8xf32>
    %cst_43 = arith.constant dense<0.000000e+00> : vector<8x8xf32>
    %141 = tpu.matmul %138, %139, %cst_43 {dimension_numbers = #tpu.dot_dimension_numbers<[1], [1], [0], [0], [0, 0, 1, 0], [], []>} : vector<8x8xf32>, vector<8x8xf32>, vector<8x8xf32> -> vector<8x8xf32>
    %142 = arith.addf %141, %10 : vector<8x8xf32>
    %cst_44 = arith.constant dense<0xFF800000> : vector<8xf32>
    %143 = vector.multi_reduction <maximumf>, %142, %cst_44 [1] : vector<8x8xf32> to vector<8xf32>
    %144 = vector.shape_cast %143 : vector<8xf32> to vector<8x1xf32>
    %145 = vector.broadcast %144 : vector<8x1xf32> to vector<8x8xf32>
    %146 = arith.subf %142, %145 : vector<8x8xf32>
    %147 = math.exp %146 : vector<8x8xf32>
    %cst_45 = arith.constant dense<0.000000e+00> : vector<8xf32>
    %148 = vector.multi_reduction <add>, %147, %cst_45 [1] : vector<8x8xf32> to vector<8xf32>
    %149 = vector.shape_cast %148 : vector<8xf32> to vector<8x1xf32>
    %cst_46 = arith.constant dense<0.000000e+00> : vector<8x8xf32>
    %150 = tpu.matmul %147, %140, %cst_46 {dimension_numbers = #tpu.dot_dimension_numbers<[1], [0], [0], [1], [0, 0, 1, 1], [], []>} : vector<8x8xf32>, vector<8x8xf32>, vector<8x8xf32> -> vector<8x8xf32>
    %151 = tpu.reciprocal %149 {approx = true} : vector<8x1xf32> -> vector<8x1xf32>
    %152 = vector.broadcast %151 : vector<8x1xf32> to vector<8x8xf32>
    %153 = arith.mulf %150, %152 : vector<8x8xf32>
    %154 = vector.extract_strided_slice %3 {offsets = [16, 0], sizes = [8, 32], strides = [1, 1]} : vector<32x32xf32> to vector<8x32xf32>
    %cst_47 = arith.constant dense<0.000000e+00> : vector<8x32xf32>
    %155 = tpu.matmul %153, %154, %cst_47 {dimension_numbers = #tpu.dot_dimension_numbers<[1], [0], [0], [1], [0, 0, 1, 1], [], []>} : vector<8x8xf32>, vector<8x32xf32>, vector<8x32xf32> -> vector<8x32xf32>
    %156 = arith.addf %137, %155 : vector<8x32xf32>
    %157 = vector.extract_strided_slice %94 {offsets = [0, 24], sizes = [8, 8], strides = [1, 1]} : vector<8x32xf32> to vector<8x8xf32>
    %158 = vector.extract_strided_slice %95 {offsets = [0, 24], sizes = [8, 8], strides = [1, 1]} : vector<8x32xf32> to vector<8x8xf32>
    %159 = vector.extract_strided_slice %96 {offsets = [0, 24], sizes = [8, 8], strides = [1, 1]} : vector<8x32xf32> to vector<8x8xf32>
    %cst_48 = arith.constant dense<0.000000e+00> : vector<8x8xf32>
    %160 = tpu.matmul %157, %158, %cst_48 {dimension_numbers = #tpu.dot_dimension_numbers<[1], [1], [0], [0], [0, 0, 1, 0], [], []>} : vector<8x8xf32>, vector<8x8xf32>, vector<8x8xf32> -> vector<8x8xf32>
    %161 = arith.addf %160, %10 : vector<8x8xf32>
    %cst_49 = arith.constant dense<0xFF800000> : vector<8xf32>
    %162 = vector.multi_reduction <maximumf>, %161, %cst_49 [1] : vector<8x8xf32> to vector<8xf32>
    %163 = vector.shape_cast %162 : vector<8xf32> to vector<8x1xf32>
    %164 = vector.broadcast %163 : vector<8x1xf32> to vector<8x8xf32>
    %165 = arith.subf %161, %164 : vector<8x8xf32>
    %166 = math.exp %165 : vector<8x8xf32>
    %cst_50 = arith.constant dense<0.000000e+00> : vector<8xf32>
    %167 = vector.multi_reduction <add>, %166, %cst_50 [1] : vector<8x8xf32> to vector<8xf32>
    %168 = vector.shape_cast %167 : vector<8xf32> to vector<8x1xf32>
    %cst_51 = arith.constant dense<0.000000e+00> : vector<8x8xf32>
    %169 = tpu.matmul %166, %159, %cst_51 {dimension_numbers = #tpu.dot_dimension_numbers<[1], [0], [0], [1], [0, 0, 1, 1], [], []>} : vector<8x8xf32>, vector<8x8xf32>, vector<8x8xf32> -> vector<8x8xf32>
    %170 = tpu.reciprocal %168 {approx = true} : vector<8x1xf32> -> vector<8x1xf32>
    %171 = vector.broadcast %170 : vector<8x1xf32> to vector<8x8xf32>
    %172 = arith.mulf %169, %171 : vector<8x8xf32>
    %173 = vector.extract_strided_slice %3 {offsets = [24, 0], sizes = [8, 32], strides = [1, 1]} : vector<32x32xf32> to vector<8x32xf32>
    %cst_52 = arith.constant dense<0.000000e+00> : vector<8x32xf32>
    %174 = tpu.matmul %172, %173, %cst_52 {dimension_numbers = #tpu.dot_dimension_numbers<[1], [0], [0], [1], [0, 0, 1, 1], [], []>} : vector<8x8xf32>, vector<8x32xf32>, vector<8x32xf32> -> vector<8x32xf32>
    %175 = arith.addf %156, %174 : vector<8x32xf32>
    %c8 = arith.constant 8 : index
    %c0_53 = arith.constant 0 : index
    %176 = vector.load %arg4[%c8, %c0_53] : memref<16x32xf32, #tpu.memory_space<vmem>>, vector<8x32xf32>
    tpu.vector_store %arg4[%c8, %c0_53], %175 {strides = array<i32>} : memref<16x32xf32, #tpu.memory_space<vmem>>, vector<8x32xf32>,
    return
  }
}

</mosaic_0001>

<bundles_post_ra>
// kernel: tpu_custom_call.1
= control target key start
LH: loop header
LB: loop body
LE: loop exit
PB: predicated region body
PF: predicated region fallthrough
CT: control target
= control target key end

     0   :  { %9 = vsyncpa [#allocation3], 0  ;;  %s1223_s0 = inlined_call_operand.hbm [shape: f32[16,96], index: 0, kind: input, shape index: {}]   ;;  %s1224_s1 = inlined_call_operand.hbm [shape: f32[96,96], index: 1, kind: input, shape index: {}]   ;;  %s1225_s2 = inlined_call_operand.hbm [shape: f32[32,32], index: 2, kind: input, shape index: {}]   ;;  %s1226_s3 = inlined_call_operand.vmem [shape: f32[1,32], index: 3, kind: input, shape index: {}]   ;;  %s1227_s4 = inlined_call_operand.hbm [shape: f32[16,32], index: 4, kind: output, shape index: {}]  }
   0x1   :  { %10 = vsyncpa [#allocation6], 0 }
   0x2   :  { %11 = vsyncpa [#allocation4], 0  ;;  %s29_s17 = sshll.u32 %s1224_s1, 4  ;;  %s1045_s18 = smov [#allocation5]   ;;  %s30_s17 = int_to_ptr.hbm [resolvable:$true] %s29_s17 }
   0x3   :  { %s31_s19 = sshll.u32 %s1045_s18, 4  ;;  %s16_s22 = sshll.u32 %s1223_s0, 4  ;;  %s32_s19 = int_to_ptr.vmem [resolvable:$true] %s31_s19  ;;  %s17_s22 = int_to_ptr.hbm [resolvable:$true] %s16_s22 }
   0x4   :  { %s1046_s23 = smov 128   ;;  %s1047_s24 = smov 8  }
   0x5   :  { %37 = dma.hbm_to_vmem [thread:$0]  %s30_s17, 1536, %s32_s19, [#allocation6], %s1046_s23, %s1046_s23, %s1047_s24  }
   0x6   :  { %s1048_s25 = smov [#allocation2]   ;;  %s42_s1 = sshll.u32 %s1225_s2, 4  ;;  %s43_s1 = int_to_ptr.hbm [resolvable:$true] %s42_s1 }
   0x7   :  { %s18_s26 = sshll.u32 %s1048_s25, 4  ;;  %s1049_s0 = smov [#allocation7]   ;;  %s19_s26 = int_to_ptr.vmem [resolvable:$true] %s18_s26 }
   0x8   :  { %24 = dma.hbm_to_vmem [thread:$0]  %s17_s22, 256, %s19_s26, [#allocation3], %s1046_s23, %s1046_s23, %s1047_s24  }
   0x9   :  { %s44_s29 = sshll.u32 %s1049_s0, 4  ;;  %s45_s29 = int_to_ptr.vmem [resolvable:$true] %s44_s29 }
   0xa   :  { %50 = dma.hbm_to_vmem [thread:$0]  %s43_s1, 512, %s45_s29, [#allocation6], %s1046_s23, %s1046_s23, %s1047_s24  }
   0xb   :  { %1039 = dma.done.wait [#allocation3], 256  }
   0xc   :  { %1040 = vsyncadd [#allocation3], 4294967040 }
   0xd   :  { %1041 = dma.done.wait [#allocation6], 2048  }
   0xe   :  { %1042 = vsyncadd [#allocation6], 4294965248  ;;  %v78_v0 = vld [vmem:[#allocation5 + $0x58] sm:$0xff]  ;;  %v77_v1 = vld [vmem:[#allocation5 + $0x50] sm:$0xff]  ;;  %vm79_vm0 = vcmask 785408   ;;  %s1050_s2 = smov 120   ;;  %v114_v27 = vlaneseq }
   0xf   :  { %90 = vmatpush.msra.mxu0 %v78_v0  ;;  %v76_v2 = vld [vmem:[#allocation5 + $0x48] sm:$0xff]  ;;  %v75_v3 = vld [vmem:[#allocation5 + $0x40] sm:$0xff]  ;;  %v74_v4 = vld [vmem:[#allocation5 + $0x38] sm:$0xff]  ;;  %s1051_s30 = smov 64   ;;  %s1052_s5 = smov 96   ;;  %vm127_vm1 = vcmask 64512  }
  0x10   :  { %v73_v5 = vld [vmem:[#allocation5 + $0x30] sm:$0xff]  ;;  %v72_v6 = vld [vmem:[#allocation5 + $0x28] sm:$0xff]  ;;  %v71_v7 = vld [vmem:[#allocation5 + $0x20] sm:$0xff]  ;;  %s1053_s6 = smov 80   ;;  %s1054_s7 = smov 88   ;;  %v115_v28 = vshrl.u32 %v114_v27, 7 }
  0x11   :  { %91 = vmatpush.msra.mxu0 %v77_v1  ;;  %v70_v8 = vld [vmem:[#allocation5 + $0x18] sm:$0xff]  ;;  %v69_v9 = vld [vmem:[#allocation5 + $0x10] sm:$0xff]  ;;  %v68_v10 = vld [vmem:[#allocation5 + $0x8] sm:$0xff]  ;;  %s1055_s8 = smov 72   ;;  %s1056_s9 = smov 112   ;;  %v117_v29 = vand.u32 127, %v114_v27 }
  0x12   :  { %v67_v11 = vld [vmem:[#allocation5] sm:$0xff]  ;;  %v65_v12 = vld [vmem:[#allocation2] sm:$0xff]  ;;  %v66_v13 = vld [vmem:[#allocation2 + $0x8] sm:$0xff]  ;;  %s1057_s10 = smov 104   ;;  %v1058_v30 = vmov 0.0   ;;  %s1059_s11 = smov 56  }
  0x13   :  { %92 = vmatpush.msra.mxu0 %v76_v2  ;;  %vm118_vm2 = vcmp.gt.s32.totalorder %v117_v29, %v115_v28  ;;  %v1138_v35 = vld [vmem:[#allocation7] sm:$0xff]  ;;  %s1060_s12 = smov 48   ;;  %s1061_s13 = smov 40   ;;  %v110_v27 = vld [vmem:[#allocation7 + $0x8] sm:$0xff]  ;;  %v111_v29 = vld [vmem:[#allocation7 + $0x10] sm:$0xff]  ;;  %vm480_vm3 = vcmask 261120  }
  0x14   :  { %v1132_v31 = vsel %vm118_vm2, -1e+13, %v1058_v30  ;;  %207 = vmatpush.msra.mxu3 %v1138_v35  ;;  %s844_s19 = sshll.u32 %s1227_s4, 4  ;;  %s845_s19 = int_to_ptr.hbm [resolvable:$true] %s844_s19 }
  0x15   :  { %93 = vmatpush.msra.mxu0 %v75_v3 }
  0x17   :  { %94 = vmatpush.msra.mxu0 %v74_v4 }
  0x19   :  { %95 = vmatpush.msra.mxu0 %v73_v5 }
  0x1b   :  { %96 = vmatpush.msra.mxu0 %v72_v6 }
  0x1d   :  { %97 = vmatpush.msra.mxu0 %v71_v7 }
  0x1f   :  { %98 = vmatpush.msra.mxu0 %v70_v8 }
  0x21   :  { %99 = vmatpush.msra.mxu0 %v69_v9 }
  0x23   :  { %100 = vmatpush.msra.mxu0 %v68_v10 }
  0x25   :  { %101 = vmatpush.msra.mxu0 %v67_v11 }
  0x26   :  { %858 = vmatmul.msk.f32.vlgmr.msra.gmra.mxu0 %vm79_vm0, %v65_v12 }
  0x2e   :  { %859 = vmatmul.msk.f32.gmra.mxu0 %vm79_vm0, %v66_v13 }
  0xa3   :  { %v1106_v14 = vpop.f32.mrf.mxu0 }
  0xa4   :  { %213 = vrot.lane.b32.xlu2 %v1106_v14, %s1050_s2  ;;  %161 = vrot.lane.b32.xlu1 %v1106_v14, %s1051_s30 }
  0xa5   :  { %125 = vrot.lane.b32.xlu0 %v1106_v14, %s1052_s5 }
  0xab   :  { %v1121_v15 = vpop.f32.mrf.mxu0 }
  0xac   :  { %304 = vrot.lane.b32.xlu2 %v1106_v14, %s1053_s6  ;;  %215 = vrot.lane.b32.xlu1 %v1106_v14, %s1054_s7 }
  0xb4   :  { %393 = vrot.lane.b32.xlu2 %v1106_v14, %s1055_s8  ;;  %302 = vrot.lane.b32.xlu1 %v1106_v14, %s1056_s9 }
  0xbc   :  { %391 = vrot.lane.b32.xlu1 %v1106_v14, %s1057_s10  ;;  %483 = vrot.lane.b32.xlu2 %v1121_v15, %s1052_s5 }
  0xc4   :  { %572 = vrot.lane.b32.xlu1 %v1121_v15, %s1054_s7  ;;  %570 = vrot.lane.b32.xlu2 %v1121_v15, %s1050_s2 }
  0xfe   :  { %v214_v19 = vpop.permute.xlu2 %213 }
 0x106   :  { %v305_v20 = vpop.permute.xlu2 %304 }
 0x10e   :  { %v394_v22 = vpop.permute.xlu2 %393 }
 0x116   :  { %v162_v16 = vpop.permute.xlu1 %161  ;;  %v484_v24 = vpop.permute.xlu2 %483 }
 0x117   :  { %v126_v17 = vpop.permute.xlu0 %125  ;;  %182 = vmatpush.msra.mxu2 %v162_v16 }
 0x118   :  { %860 = vmatpush.xpose.msk.msra.mxu1 %vm127_vm1, %v126_v17 }
 0x11b   :  { %861 = vmatmul.msk.f32.vlgmr.msra.gmra.mxu1 %vm127_vm1, %v1106_v14 }
 0x11c   :  { %296 = vmatpush.msrb.mxu1 %v110_v27 }
 0x11e   :  { %v216_v18 = vpop.permute.xlu1 %215  ;;  %v571_v26 = vpop.permute.xlu2 %570  ;;  %385 = vmatpush.msra.mxu1 %v111_v29 }
 0x11f   :  { %864 = vmatpush.xpose.msk.msrb.mxu2 %vm127_vm1, %v216_v18 }
 0x126   :  { %v303_v21 = vpop.permute.xlu1 %302 }
 0x12e   :  { %v392_v23 = vpop.permute.xlu1 %391 }
 0x136   :  { %v573_v25 = vpop.permute.xlu1 %572 }
 0x137   :  { %880 = vmatpush.xpose.msk.msrb.mxu0 %vm127_vm1, %v573_v25 }
 0x13a   :  { %881 = vmatmul.msk.f32.vlgmr.msrb.gmra.mxu0 %vm127_vm1, %v571_v26 }
 0x198   :  { %v149_v32 = vpop.f32.mrf.mxu1 }
 0x199   :  { %v150_v33 = vadd.f32 %v149_v32, %v1132_v31 }
 0x19b   :  { %v152_v34 = vsel %vm127_vm1, %v150_v33, -inf }
 0x19c   :  { %153 = vmax.xlane.f32.xlu0 %v152_v34 }
 0x1b0   :  { %250 = vrot.lane.b32.xlu0 %v1106_v14, %s1059_s11 }
 0x1b7   :  { %v595_v40 = vpop.f32.mrf.mxu0 }
 0x1b8   :  { %v596_v42 = vadd.f32 %v595_v40, %v1132_v31 }
 0x1ba   :  { %v598_v43 = vsel %vm127_vm1, %v596_v42, -inf }
 0x20f   :  { %v154_v36 = vpop.xlane.xlu0 %153 }
 0x210   :  { %v155_v37 = vsub.f32 %v150_v33, %v154_v36 }
 0x212   :  { %v156_v38 = vmul.f32 1.442695, %v155_v37 }
 0x214   :  { %911 = vpow2.f32 %v156_v38 }
 0x21a   :  { %v912_v39 = vpop.eup %911 }
 0x21b   :  { %862 = vmatmul.msk.f32.vlgmr.msra.gmra.mxu2 %vm127_vm1, %v912_v39  ;;  %v158_v41 = vsel %vm127_vm1, %v912_v39, 0.0 }
 0x21c   :  { %868 = vmatpush.xpose.msk.msra.mxu2 %vm127_vm1, %v305_v20  ;;  %159 = vadd.xlane.f32.xlu1 %v158_v41 }
 0x222   :  { %v251_v44 = vpop.permute.xlu0 %250 }
 0x223   :  { %865 = vmatmul.msk.f32.vlgmr.msrb.gmra.mxu2 %vm127_vm1, %v214_v19  ;;  %271 = vmatpush.msrb.mxu3 %v251_v44 }
 0x224   :  { %872 = vmatpush.xpose.msk.msrb.mxu2 %vm127_vm1, %v394_v22  ;;  %599 = vmax.xlane.f32.xlu1 %v598_v43 }
 0x22b   :  { %869 = vmatmul.msk.f32.vlgmr.msra.gmra.mxu2 %vm127_vm1, %v303_v21 }
 0x22c   :  { %876 = vmatpush.xpose.msk.msra.mxu2 %vm127_vm1, %v484_v24 }
 0x233   :  { %873 = vmatmul.msk.f32.vlgmr.msrb.gmra.mxu2 %vm127_vm1, %v392_v23 }
 0x23b   :  { %877 = vmatmul.msk.f32.vlgmr.msra.gmra.mxu2 %vm127_vm1, %v1121_v15 }
 0x28f   :  { %v160_v45 = vpop.xlane.xlu1 %159 }
 0x290   :  { %913 = vrcp.f32 %v160_v45 }
 0x296   :  { %v914_v46 = vpop.eup %913 }
 0x297   :  { %v600_v52 = vpop.xlane.xlu1 %599 }
 0x298   :  { %v601_v55 = vsub.f32 %v596_v42, %v600_v52 }
 0x29a   :  { %v602_v57 = vmul.f32 1.442695, %v601_v55 }
 0x29c   :  { %915 = vpow2.f32 %v602_v57 }
 0x29e   :  { %v184_v47 = vpop.f32.mrf.mxu2 }
 0x29f   :  { %v188_v48 = vmul.f32 %v914_v46, %v184_v47 }
 0x2a1   :  { %863 = vmatmul.msk.f32.vlgmr.msra.gmra.mxu3 %vm127_vm1, %v188_v48 }
 0x2a2   :  { %v916_v62 = vpop.eup %915 }
 0x2a3   :  { %v604_v1 = vsel %vm127_vm1, %v916_v62, 0.0 }
 0x2a6   :  { %v238_v49 = vpop.f32.mrf.mxu2 }
 0x2a7   :  { %v239_v50 = vadd.f32 %v238_v49, %v1132_v31 }
 0x2a9   :  { %v241_v51 = vsel %vm127_vm1, %v239_v50, -inf }
 0x2aa   :  { %242 = vmax.xlane.f32.xlu2 %v241_v51 }
 0x2ae   :  { %v327_v53 = vpop.f32.mrf.mxu2 }
 0x2af   :  { %v328_v54 = vadd.f32 %v327_v53, %v1132_v31 }
 0x2b1   :  { %v330_v56 = vsel %vm127_vm1, %v328_v54, -inf }
 0x2b2   :  { %331 = vmax.xlane.f32.xlu0 %v330_v56 }
 0x2b6   :  { %v416_v58 = vpop.f32.mrf.mxu2 }
 0x2b7   :  { %v417_v59 = vadd.f32 %v416_v58, %v1132_v31 }
 0x2b9   :  { %v419_v60 = vsel %vm127_vm1, %v417_v59, -inf }
 0x2ba   :  { %420 = vmax.xlane.f32.xlu0 %v419_v60 }
 0x2be   :  { %v506_v61 = vpop.f32.mrf.mxu2 }
 0x2bf   :  { %v507_v63 = vadd.f32 %v506_v61, %v1132_v31 }
 0x2c1   :  { %v509_v0 = vsel %vm127_vm1, %v507_v63, -inf }
 0x2c2   :  { %339 = vrot.lane.b32.xlu2 %v1106_v14, %s1060_s12  ;;  %510 = vmax.xlane.f32.xlu1 %v509_v0 }
 0x2c3   :  { %605 = vadd.xlane.f32.xlu0 %v604_v1 }
 0x2ca   :  { %518 = vrot.lane.b32.xlu2 %v1121_v15, %s1051_s30 }
 0x2d2   :  { %607 = vrot.lane.b32.xlu2 %v1121_v15, %s1059_s11 }
 0x2d7   :  { %661 = vrot.lane.b32.xlu0 %v1121_v15, %s1053_s6 }
 0x2db   :  { %428 = vrot.lane.b32.xlu1 %v1106_v14, %s1061_s13 }
 0x31d   :  { %v243_v2 = vpop.xlane.xlu2 %242 }
 0x31e   :  { %v244_v3 = vsub.f32 %v239_v50, %v243_v2 }
 0x320   :  { %v245_v4 = vmul.f32 1.442695, %v244_v3 }
 0x322   :  { %917 = vpow2.f32 %v245_v4 }
 0x324   :  { %v209_v33 = vpop.f32.mrf.mxu3 }
 0x325   :  { %v332_v5 = vpop.xlane.xlu0 %331  ;;  %v340_v6 = vpop.permute.xlu2 %339 }
 0x326   :  { %v333_v7 = vsub.f32 %v328_v54, %v332_v5  ;;  %360 = vmatpush.msra.mxu3 %v340_v6 }
 0x328   :  { %v918_v8 = vpop.eup %917  ;;  %v334_v9 = vmul.f32 1.442695, %v333_v7 }
 0x329   :  { %866 = vmatmul.msk.f32.vlgmr.msrb.gmra.mxu3 %vm127_vm1, %v918_v8  ;;  %v247_v10 = vsel %vm127_vm1, %v918_v8, 0.0 }
 0x32a   :  { %919 = vpow2.f32 %v334_v9  ;;  %248 = vadd.xlane.f32.xlu0 %v247_v10 }
 0x32d   :  { %v421_v11 = vpop.xlane.xlu0 %420  ;;  %v519_v12 = vpop.permute.xlu2 %518 }
 0x32e   :  { %v422_v13 = vsub.f32 %v417_v59, %v421_v11  ;;  %v910_v59 = vld [vmem:[%s1226_s3] ss:$0 sm:$0xff]  ;;  %s1062_s3 = smov [#allocation8]  }
 0x32f   :  { %v212_v0 = vadd.f32 %v910_v59, %v209_v33  ;;  %s842_s16 = sshll.u32 %s1062_s3, 4  ;;  %s843_s16 = int_to_ptr.vmem [resolvable:$true] %s842_s16 }
 0x330   :  { %v920_v14 = vpop.eup %919  ;;  %v423_v16 = vmul.f32 1.442695, %v422_v13 }
 0x331   :  { %870 = vmatmul.msk.f32.vlgmr.msra.gmra.mxu3 %vm127_vm1, %v920_v14  ;;  %v336_v17 = vsel %vm127_vm1, %v920_v14, 0.0 }
 0x332   :  { %921 = vpow2.f32 %v423_v16  ;;  %337 = vadd.xlane.f32.xlu2 %v336_v17 }
 0x335   :  { %v511_v18 = vpop.xlane.xlu1 %510  ;;  %v608_v19 = vpop.permute.xlu2 %607 }
 0x336   :  { %v512_v20 = vsub.f32 %v507_v63, %v511_v18  ;;  %628 = vmatpush.msrb.mxu2 %v608_v19  ;;  %v606_v28 = vpop.xlane.xlu0 %605 }
 0x337   :  { %882 = vmatmul.msk.f32.vlgmr.msrb.gmra.mxu2 %vm127_vm1, %v916_v62 }
 0x338   :  { %v922_v21 = vpop.eup %921  ;;  %v513_v22 = vmul.f32 1.442695, %v512_v20  ;;  %742 = vmatpush.msra.mxu2 %v111_v29 }
 0x339   :  { %v425_v23 = vsel %vm127_vm1, %v922_v21, 0.0 }
 0x33a   :  { %923 = vpow2.f32 %v513_v22  ;;  %426 = vadd.xlane.f32.xlu1 %v425_v23 }
 0x340   :  { %v924_v24 = vpop.eup %923 }
 0x341   :  { %v515_v25 = vsel %vm127_vm1, %v924_v24, 0.0 }
 0x342   :  { %516 = vadd.xlane.f32.xlu0 %v515_v25 }
 0x349   :  { %v662_v30 = vpop.permute.xlu0 %661 }
 0x34a   :  { %750 = vrot.lane.b32.xlu2 %v1121_v15, %s1055_s8 }
 0x34d   :  { %v429_v26 = vpop.permute.xlu1 %428 }
 0x34e   :  { %449 = vmatpush.msrb.mxu3 %v429_v26 }
 0x34f   :  { %874 = vmatmul.msk.f32.vlgmr.msrb.gmra.mxu3 %vm127_vm1, %v922_v21 }
 0x350   :  { %539 = vmatpush.msra.mxu3 %v519_v12 }
 0x352   :  { %653 = vmatpush.msrb.mxu3 %v110_v27 }
 0x353   :  { %748 = vrot.lane.b32.xlu1 %v1121_v15, %s1057_s10 }
 0x356   :  { %659 = vrot.lane.b32.xlu0 %v1121_v15, %s1056_s9 }
 0x357   :  { %878 = vmatmul.msk.f32.vlgmr.msra.gmra.mxu3 %vm127_vm1, %v924_v24 }
 0x35b   :  { %696 = vrot.lane.b32.xlu1 %v1121_v15, %s1060_s12 }
 0x363   :  { %785 = vrot.lane.b32.xlu1 %v1121_v15, %s1061_s13  ;;  %v112_v15 = vld [vmem:[#allocation7 + $0x18] sm:$0xff] }
 0x39d   :  { %v249_v32 = vpop.xlane.xlu0 %248 }
 0x39e   :  { %925 = vrcp.f32 %v249_v32 }
 0x3a4   :  { %v926_v36 = vpop.eup %925 }
 0x3a5   :  { %v338_v34 = vpop.xlane.xlu2 %337 }
 0x3a6   :  { %927 = vrcp.f32 %v338_v34 }
 0x3a7   :  { %929 = vrcp.f32 %v606_v28 }
 0x3ac   :  { %v273_v37 = vpop.f32.mrf.mxu3  ;;  %v928_v40 = vpop.eup %927 }
 0x3ad   :  { %v277_v38 = vmul.f32 %v926_v36, %v273_v37  ;;  %v751_v39 = vpop.permute.xlu2 %750  ;;  %v930_v43 = vpop.eup %929 }
 0x3ae   :  { %888 = vmatpush.xpose.msk.msra.mxu3 %vm127_vm1, %v751_v39  ;;  %v427_v46 = vpop.xlane.xlu1 %426 }
 0x3af   :  { %867 = vmatmul.msk.f32.vlgmr.msrb.gmra.mxu1 %vm127_vm1, %v277_v38  ;;  %931 = vrcp.f32 %v427_v46 }
 0x3b0   :  { %474 = vmatpush.msrb.mxu1 %v112_v15 }
 0x3b4   :  { %v362_v41 = vpop.f32.mrf.mxu3 }
 0x3b5   :  { %v366_v42 = vmul.f32 %v928_v40, %v362_v41  ;;  %v517_v49 = vpop.xlane.xlu0 %516  ;;  %v932_v50 = vpop.eup %931 }
 0x3b6   :  { %933 = vrcp.f32 %v517_v49 }
 0x3b7   :  { %871 = vmatmul.msk.f32.vlgmr.msra.gmra.mxu1 %vm127_vm1, %v366_v42 }
 0x3b8   :  { %564 = vmatpush.msra.mxu1 %v1138_v35 }
 0x3ba   :  { %v630_v44 = vpop.f32.mrf.mxu2 }
 0x3bb   :  { %v634_v45 = vmul.f32 %v930_v43, %v630_v44 }
 0x3bc   :  { %v934_v35 = vpop.eup %933 }
 0x3bd   :  { %883 = vmatmul.msk.f32.vlgmr.msrb.gmra.mxu3 %vm127_vm1, %v634_v45 }
 0x3c5   :  { %v749_v47 = vpop.permute.xlu1 %748 }
 0x3c6   :  { %889 = vmatmul.msk.f32.vlgmr.msra.gmra.mxu3 %vm127_vm1, %v749_v47 }
 0x3c8   :  { %v660_v56 = vpop.permute.xlu0 %659 }
 0x3cd   :  { %v697_v48 = vpop.permute.xlu1 %696 }
 0x3ce   :  { %717 = vmatpush.msra.mxu0 %v697_v48 }
 0x3d0   :  { %831 = vmatpush.msrb.mxu0 %v112_v15 }
 0x3d2   :  { %v451_v51 = vpop.f32.mrf.mxu3 }
 0x3d3   :  { %v455_v52 = vmul.f32 %v932_v50, %v451_v51 }
 0x3d5   :  { %875 = vmatmul.msk.f32.vlgmr.msrb.gmra.mxu1 %vm127_vm1, %v455_v52  ;;  %v786_v55 = vpop.permute.xlu1 %785 }
 0x3d6   :  { %884 = vmatpush.xpose.msk.msrb.mxu1 %vm127_vm1, %v662_v30 }
 0x3da   :  { %v541_v53 = vpop.f32.mrf.mxu3 }
 0x3db   :  { %v545_v54 = vmul.f32 %v934_v35, %v541_v53 }
 0x3dd   :  { %879 = vmatmul.msk.f32.vlgmr.msra.gmra.mxu1 %vm127_vm1, %v545_v54 }
 0x3de   :  { %806 = vmatpush.msra.mxu1 %v786_v55 }
 0x3e5   :  { %885 = vmatmul.msk.f32.vlgmr.msrb.gmra.mxu1 %vm127_vm1, %v660_v56 }
 0x42c   :  { %v298_v57 = vpop.f32.mrf.mxu1 }
 0x42d   :  { %v301_v1 = vadd.f32 %v298_v57, %v212_v0 }
 0x434   :  { %v387_v61 = vpop.f32.mrf.mxu1 }
 0x435   :  { %v390_v2 = vadd.f32 %v387_v61, %v301_v1 }
 0x440   :  { %v655_v58 = vpop.f32.mrf.mxu3 }
 0x449   :  { %v773_v60 = vpop.f32.mrf.mxu3 }
 0x44a   :  { %v774_v62 = vadd.f32 %v773_v60, %v1132_v31 }
 0x44c   :  { %v776_v63 = vsel %vm127_vm1, %v774_v62, -inf }
 0x44d   :  { %777 = vmax.xlane.f32.xlu2 %v776_v63 }
 0x452   :  { %v476_v3 = vpop.f32.mrf.mxu1 }
 0x453   :  { %v479_v4 = vadd.f32 %v476_v3, %v390_v2 }
 0x455   :  { %481 = vst.msk [vmem:[#allocation8] sm:$0xff] %vm480_vm3, %v479_v4 }
 0x45a   :  { %v566_v5 = vpop.f32.mrf.mxu1 }
 0x45b   :  { %v569_v6 = vadd.f32 %v910_v59, %v566_v5 }
 0x45d   :  { %v658_v7 = vadd.f32 %v655_v58, %v569_v6 }
 0x462   :  { %v684_v8 = vpop.f32.mrf.mxu1 }
 0x463   :  { %v685_v9 = vadd.f32 %v684_v8, %v1132_v31 }
 0x465   :  { %v687_v10 = vsel %vm127_vm1, %v685_v9, -inf }
 0x466   :  { %688 = vmax.xlane.f32.xlu0 %v687_v10 }
 0x4c0   :  { %v778_v11 = vpop.xlane.xlu2 %777 }
 0x4c1   :  { %v779_v12 = vsub.f32 %v774_v62, %v778_v11 }
 0x4c3   :  { %v780_v13 = vmul.f32 1.442695, %v779_v12 }
 0x4c5   :  { %935 = vpow2.f32 %v780_v13 }
 0x4cb   :  { %v936_v14 = vpop.eup %935 }
 0x4cc   :  { %890 = vmatmul.msk.f32.vlgmr.msra.gmra.mxu1 %vm127_vm1, %v936_v14  ;;  %v782_v16 = vsel %vm127_vm1, %v936_v14, 0.0 }
 0x4cd   :  { %783 = vadd.xlane.f32.xlu0 %v782_v16 }
 0x4d9   :  { %v689_v17 = vpop.xlane.xlu0 %688 }
 0x4da   :  { %v690_v18 = vsub.f32 %v685_v9, %v689_v17 }
 0x4dc   :  { %v691_v19 = vmul.f32 1.442695, %v690_v18 }
 0x4de   :  { %937 = vpow2.f32 %v691_v19 }
 0x4e4   :  { %v938_v20 = vpop.eup %937 }
 0x4e5   :  { %886 = vmatmul.msk.f32.vlgmr.msra.gmra.mxu0 %vm127_vm1, %v938_v20  ;;  %v693_v31 = vsel %vm127_vm1, %v938_v20, 0.0 }
 0x4e6   :  { %694 = vadd.xlane.f32.xlu1 %v693_v31 }
 0x540   :  { %v784_v21 = vpop.xlane.xlu0 %783 }
 0x541   :  { %939 = vrcp.f32 %v784_v21 }
 0x547   :  { %v940_v22 = vpop.eup %939 }
 0x549   :  { %v808_v23 = vpop.f32.mrf.mxu1 }
 0x54a   :  { %v812_v24 = vmul.f32 %v940_v22, %v808_v23 }
 0x54c   :  { %891 = vmatmul.msk.f32.vlgmr.msrb.gmra.mxu0 %vm127_vm1, %v812_v24 }
 0x559   :  { %v695_v25 = vpop.xlane.xlu1 %694 }
 0x55a   :  { %941 = vrcp.f32 %v695_v25 }
 0x560   :  { %v942_v26 = vpop.eup %941 }
 0x562   :  { %v719_v27 = vpop.f32.mrf.mxu0 }
 0x563   :  { %v723_v28 = vmul.f32 %v942_v26, %v719_v27 }
 0x565   :  { %887 = vmatmul.msk.f32.vlgmr.msra.gmra.mxu2 %vm127_vm1, %v723_v28 }
 0x5c9   :  { %v833_v32 = vpop.f32.mrf.mxu0 }
 0x5e8   :  { %v744_v29 = vpop.f32.mrf.mxu2 }
 0x5e9   :  { %v747_v30 = vadd.f32 %v744_v29, %v658_v7 }
 0x5eb   :  { %v836_v33 = vadd.f32 %v833_v32, %v747_v30 }
 0x5ed   :  { %837 = vst.msk [vmem:[#allocation8 + $0x8] sm:$0xff] %vm480_vm3, %v836_v33 }
 0x5ee   :  { %850 = dma.vmem_to_hbm [thread:$0]  %s843_s16, 256, %s845_s19, [#allocation4], %s1046_s23, %s1046_s23, %s1047_s24  }
 0x5ef   :  { %1043 = dma.done.wait [#allocation4], 256  }
 0x5f0   :  { %1044 = vsyncadd [#allocation4], 4294967040 }
 0x5f1   :  { %855 = vsyncpa [#allocation3], 1 }
 0x5f2   :  { %856 = vsyncpa [#allocation6], 1 }
 0x5f3   :  { %857 = vsyncpa [#allocation4], 1 }

</bundles_post_ra>
